<compile_context>
chip_gen: v7x
topology: tpu7x:2x2x1
jax: 0.10.0
libtpu: 0.0.40
codegen_flags: <defaults>
</compile_context>

<pallas_src>
import functools

import jax
import jax.numpy as jnp
from jax.experimental import pallas as pl
from jax.experimental.pallas import tpu as pltpu


def _round_up(x: int, m: int) -> int:
    return ((x + m - 1) // m) * m


def _use_bf16_elementwise() -> bool:
    """bf16 tanh/softplus only on chips with a bf16 VPU/EUP (v6e / v7x)."""
    try:
        kind = jax.devices()[0].device_kind.lower()
    except Exception:
        return False
    return ("v6" in kind) or ("v7" in kind) or ("7x" in kind)


def policy_value_kernel(
    obs_ref, hid_ref,                  # [TB, OBS] bf16, [TB, HID] bf16
    w_op_ref, b_op_ref,                # [OBS, EMB]   bf16, [1, EMB]    f32
    w_fp_ref, b_fp_ref,                # [HID, EMB]   bf16, [1, EMB]    f32
    w_oh_ref, b_oh_ref,                # [2*EMB, EMB] bf16, [1, EMB]    f32
    w_c1_ref, b_c1_ref,                # [EMB, CORE]  bf16, [1, CORE]   f32
    w_c2_ref, b_c2_ref,                # [CORE, CORE] bf16, [1, CORE]   f32
    w_hd_ref, b_hd_ref,                # [CORE, HEAD_N] bf16, [1, HEAD_N] f32 ([mean|std|0pad])
    out_ref,                           # [TB, HEAD_N] f32  ([mean | std | pad])
    *, act_dim: int, elementwise_bf16: bool,
):
    f32, bf16 = jnp.float32, jnp.bfloat16
    act_dt = bf16 if elementwise_bf16 else f32

    def tanh_act(z_f32):
        # v6e/v7x: tanh on bf16 (bf16 EUP); v5e: f32 EUP path. Next matmul wants bf16.
        return jnp.tanh(z_f32.astype(act_dt)).astype(bf16)

    # observation_projection / forward_dynamics_hidden_projection (f32 accumulate).
    obs_e = jnp.dot(obs_ref[...], w_op_ref[...], preferred_element_type=f32) + b_op_ref[...]
    hid_e = jnp.dot(hid_ref[...], w_fp_ref[...], preferred_element_type=f32) + b_fp_ref[...]

    # observation_hidden_projection: lane-concat (both halves 128-lane aligned)
    # then a single K = 2*EMB contraction + tanh.
    emb = jnp.concatenate([obs_e, hid_e], axis=-1).astype(bf16)
    x = tanh_act(jnp.dot(emb, w_oh_ref[...], preferred_element_type=f32) + b_oh_ref[...])

    # core_model: 2-layer tanh MLP.
    h = tanh_act(jnp.dot(x, w_c1_ref[...], preferred_element_type=f32) + b_c1_ref[...])
    h = tanh_act(jnp.dot(h, w_c2_ref[...], preferred_element_type=f32) + b_c2_ref[...])

    # dist_head: fused lane-dense [mean | pre_std | pad] matmul; softplus only on
    # the std lanes via a lane mask (single unmasked 128-lane store).
    head = jnp.dot(h, w_hd_ref[...], preferred_element_type=f32) + b_hd_ref[...]
    lane = jax.lax.broadcasted_iota(jnp.int32, head.shape, dimension=1)
    std_branch = jnp.logaddexp(head.astype(act_dt), 0.0).astype(f32) + 1e-5  # stable softplus + eps
    out_ref[...] = jnp.where(lane >= act_dim, std_branch, head).astype(out_ref.dtype)


def pack_params(p):
    """Host-side re-packing of per-layer weights into fused bf16 operands."""
    bf16, f32 = jnp.bfloat16, jnp.float32
    core_dim, act_dim = p["w_m"].shape
    head_n = max(128, _round_up(2 * act_dim, 128))

    # Lane-dense head: [mean | std | zero-pad] -> 128-lane multiple.
    w_hd = jnp.zeros((core_dim, head_n), f32)
    w_hd = w_hd.at[:, :act_dim].set(p["w_m"])
    w_hd = w_hd.at[:, act_dim:2 * act_dim].set(p["w_s"])
    b_hd = jnp.zeros((1, head_n), f32)
    b_hd = b_hd.at[:, :act_dim].set(p["b_m"])
    b_hd = b_hd.at[:, act_dim:2 * act_dim].set(p["b_s"])

    return {
        "w_op": p["w_op"].astype(bf16), "b_op": p["b_op"].astype(f32),
        "w_fp": p["w_fp"].astype(bf16), "b_fp": p["b_fp"].astype(f32),
        # concat(obs_emb, hid_emb) @ W  ==  obs_emb @ W[:emb] + hid_emb @ W[emb:]
        "w_oh": jnp.concatenate([p["w_io"], p["w_ih"]], axis=0).astype(bf16),
        "b_oh": p["b_i"].astype(f32),
        "w_c1": p["w_c1"].astype(bf16), "b_c1": p["b_c1"].astype(f32),
        "w_c2": p["w_c2"].astype(bf16), "b_c2": p["b_c2"].astype(f32),
        "w_hd": w_hd.astype(bf16), "b_hd": b_hd,
    }


def policy_or_value_network(observation, forward_dynamics_hidden, packed, *, act_dim):
    """Fused forward pass. Returns (mean, std) of the Normal distribution."""
    B = observation.shape[0]
    obs = observation.astype(jnp.bfloat16)
    hid = forward_dynamics_hidden.astype(jnp.bfloat16)
    obs_dim, hid_dim = obs.shape[1], hid.shape[1]
    head_n = packed["w_hd"].shape[1]
    emb = packed["w_op"].shape[1]
    core = packed["w_c1"].shape[1]

    elementwise_bf16 = _use_bf16_elementwise()

    # Batch tiling: whole batch in one block if small; otherwise at least two
    # blocks (shards across v7x's two TensorCores), tile capped at 1024 rows.
    if B <= 256:
        block_b, n_blocks = B, 1
    else:
        block_b = min(1024, _round_up(pl.cdiv(B, 2), 16))
        n_blocks = pl.cdiv(B, block_b)
    padded_b = n_blocks * block_b
    if padded_b != B:
        obs = jnp.pad(obs, ((0, padded_b - B), (0, 0)))
        hid = jnp.pad(hid, ((0, padded_b - B), (0, 0)))

    weights = (
        packed["w_op"], packed["b_op"],
        packed["w_fp"], packed["b_fp"],
        packed["w_oh"], packed["b_oh"],
        packed["w_c1"], packed["b_c1"],
        packed["w_c2"], packed["b_c2"],
        packed["w_hd"], packed["b_hd"],
    )

    in_specs = [
        pl.BlockSpec((block_b, obs_dim), lambda i: (i, 0)),
        pl.BlockSpec((block_b, hid_dim), lambda i: (i, 0)),
    ]
    # Constant index_map -> weights DMA'd once, resident in VMEM across grid steps.
    in_specs += [pl.BlockSpec(w.shape, lambda i: (0, 0)) for w in weights]
    out_spec = pl.BlockSpec((block_b, head_n), lambda i: (i, 0))
    out_shape = jax.ShapeDtypeStruct((padded_b, head_n), jnp.float32)

    flops = 2 * padded_b * (
        obs_dim * emb + hid_dim * emb + 2 * emb * emb + emb * core + core * core + core * head_n
    )
    transcendentals = padded_b * (emb + 2 * core + 2 * head_n)
    bytes_accessed = (
        obs.size * obs.dtype.itemsize
        + hid.size * hid.dtype.itemsize
        + sum(int(w.size) * w.dtype.itemsize for w in weights)
        + padded_b * head_n * 4
    )

    out = pl.pallas_call(
        functools.partial(
            policy_value_kernel, act_dim=act_dim, elementwise_bf16=elementwise_bf16
        ),
        out_shape=out_shape,
        grid=(n_blocks,),
        in_specs=in_specs,
        out_specs=out_spec,
        compiler_params=pltpu.CompilerParams(
            dimension_semantics=("parallel",),
            vmem_limit_bytes=32 << 20,
        ),
        cost_estimate=pl.CostEstimate(
            flops=flops,
            transcendentals=transcendentals,
            bytes_accessed=bytes_accessed,
        ),
    )(obs, hid, *weights)

    out = out[:B]
    return out[:, :act_dim], out[:, act_dim:2 * act_dim]


def init_params(key, obs_dim, hid_dim, emb_dim, core_dim, act_dim):
    keys = jax.random.split(key, 18)

    def lin(k, fan_in, fan_out):
        scale = 1.0 / jnp.sqrt(jnp.float32(fan_in))
        return jax.random.uniform(k, (fan_in, fan_out), jnp.float32, -scale, scale)

    def bias(k, fan_in, n):
        scale = 1.0 / jnp.sqrt(jnp.float32(fan_in))
        return jax.random.uniform(k, (1, n), jnp.float32, -scale, scale)

    return {
        "w_op": lin(keys[0], obs_dim, emb_dim),  "b_op": bias(keys[9], obs_dim, emb_dim),
        "w_fp": lin(keys[1], hid_dim, emb_dim),  "b_fp": bias(keys[10], hid_dim, emb_dim),
        "w_io": lin(keys[2], emb_dim, emb_dim),
        "w_ih": lin(keys[3], emb_dim, emb_dim),
        "b_i":  bias(keys[11], 2 * emb_dim, emb_dim),
        "w_c1": lin(keys[4], emb_dim, core_dim), "b_c1": bias(keys[12], emb_dim, core_dim),
        "w_c2": lin(keys[5], core_dim, core_dim), "b_c2": bias(keys[13], core_dim, core_dim),
        "w_m":  lin(keys[6], core_dim, act_dim),  "b_m": bias(keys[14], core_dim, act_dim),
        "w_s":  lin(keys[7], core_dim, act_dim),  "b_s": bias(keys[15], core_dim, act_dim),
    }


def _reference(observation, hidden, p, *, elementwise_bf16):
    """Pure-JAX reference mirroring the kernel's numeric policy (bf16 matmul
    operands, f32 accumulation; elementwise dtype follows the same flag)."""
    bf16, f32 = jnp.bfloat16, jnp.float32
    act_dt = bf16 if elementwise_bf16 else f32

    def mm(a, w):
        return jnp.dot(a.astype(bf16), w.astype(bf16), preferred_element_type=f32)

    def tanh_act(z):
        return jnp.tanh(z.astype(act_dt)).astype(f32)

    obs_e = mm(observation, p["w_op"]) + p["b_op"]
    hid_e = mm(hidden, p["w_fp"]) + p["b_fp"]
    x = tanh_act(mm(obs_e, p["w_io"]) + mm(hid_e, p["w_ih"]) + p["b_i"])
    h = tanh_act(mm(x, p["w_c1"]) + p["b_c1"])
    h = tanh_act(mm(h, p["w_c2"]) + p["b_c2"])
    mean = mm(h, p["w_m"]) + p["b_m"]
    pre_std = mm(h, p["w_s"]) + p["b_s"]
    std = jax.nn.softplus(pre_std.astype(act_dt)).astype(f32) + 1e-5
    return mean, std


if __name__ == "__main__":
    B, OBS_DIM, HID_DIM, EMB, CORE, ACT = 8, 32, 32, 128, 128, 16

    key = jax.random.PRNGKey(0)
    k_obs, k_hid, k_par = jax.random.split(key, 3)

    observation = jax.random.normal(k_obs, (B, OBS_DIM), jnp.float32)
    fd_hidden = jax.random.normal(k_hid, (B, HID_DIM), jnp.float32)
    params = init_params(k_par, OBS_DIM, HID_DIM, EMB, CORE, ACT)
    packed = pack_params(params)

    fwd = jax.jit(functools.partial(policy_or_value_network, act_dim=ACT))
    mean, std = fwd(observation, fd_hidden, packed)
    jax.block_until_ready((mean, std))

    use_bf16_ew = _use_bf16_elementwise()
    ref_mean, ref_std = _reference(observation, fd_hidden, params, elementwise_bf16=use_bf16_ew)
    tol = 2e-2 if use_bf16_ew else 2e-3  # bf16 elementwise shifts numerics slightly

    assert mean.shape == (B, ACT) and std.shape == (B, ACT)
    assert jnp.allclose(mean, ref_mean, atol=tol, rtol=tol), float(
        jnp.max(jnp.abs(mean - ref_mean)))
    assert jnp.allclose(std, ref_std, atol=tol, rtol=tol), float(
        jnp.max(jnp.abs(std - ref_std)))
    assert bool(jnp.all(std > 0))

    print("KERNEL_OK")
</pallas_src>

<mosaic_0001>
module attributes {stable_mosaic.version = 11 : i64} {
  func.func @policy_value_kernel(%arg0: i32, %arg1: memref<8x32xbf16, #tpu.memory_space<vmem>>, %arg2: memref<8x32xbf16, #tpu.memory_space<vmem>>, %arg3: memref<32x128xbf16, #tpu.memory_space<vmem>>, %arg4: memref<1x128xf32, #tpu.memory_space<vmem>>, %arg5: memref<32x128xbf16, #tpu.memory_space<vmem>>, %arg6: memref<1x128xf32, #tpu.memory_space<vmem>>, %arg7: memref<256x128xbf16, #tpu.memory_space<vmem>>, %arg8: memref<1x128xf32, #tpu.memory_space<vmem>>, %arg9: memref<128x128xbf16, #tpu.memory_space<vmem>>, %arg10: memref<1x128xf32, #tpu.memory_space<vmem>>, %arg11: memref<128x128xbf16, #tpu.memory_space<vmem>>, %arg12: memref<1x128xf32, #tpu.memory_space<vmem>>, %arg13: memref<128x128xbf16, #tpu.memory_space<vmem>>, %arg14: memref<1x128xf32, #tpu.memory_space<vmem>>, %arg15: memref<8x128xf32, #tpu.memory_space<vmem>>) attributes {dimension_semantics = [#tpu.dimension_semantics<parallel>], iteration_bounds = array<i64: 1>, scalar_prefetch = 0 : i64, scratch_operands = 0 : i64, tpu.core_type = #tpu.core_type<tc>, window_params = [{transform_indices = @transform_0, window_bounds = array<i64: 8, 32>}, {transform_indices = @transform_1, window_bounds = array<i64: 8, 32>}, {pipeline_mode = #tpu.pipeline_mode<synchronous>, transform_indices = @transform_2, window_bounds = array<i64: 32, 128>}, {pipeline_mode = #tpu.pipeline_mode<synchronous>, transform_indices = @transform_3, window_bounds = array<i64: 1, 128>}, {pipeline_mode = #tpu.pipeline_mode<synchronous>, transform_indices = @transform_4, window_bounds = array<i64: 32, 128>}, {pipeline_mode = #tpu.pipeline_mode<synchronous>, transform_indices = @transform_5, window_bounds = array<i64: 1, 128>}, {pipeline_mode = #tpu.pipeline_mode<synchronous>, transform_indices = @transform_6, window_bounds = array<i64: 256, 128>}, {pipeline_mode = #tpu.pipeline_mode<synchronous>, transform_indices = @transform_7, window_bounds = array<i64: 1, 128>}, {pipeline_mode = #tpu.pipeline_mode<synchronous>, transform_indices = @transform_8, window_bounds = array<i64: 128, 128>}, {pipeline_mode = #tpu.pipeline_mode<synchronous>, transform_indices = @transform_9, window_bounds = array<i64: 1, 128>}, {pipeline_mode = #tpu.pipeline_mode<synchronous>, transform_indices = @transform_10, window_bounds = array<i64: 128, 128>}, {pipeline_mode = #tpu.pipeline_mode<synchronous>, transform_indices = @transform_11, window_bounds = array<i64: 1, 128>}, {pipeline_mode = #tpu.pipeline_mode<synchronous>, transform_indices = @transform_12, window_bounds = array<i64: 128, 128>}, {pipeline_mode = #tpu.pipeline_mode<synchronous>, transform_indices = @transform_13, window_bounds = array<i64: 1, 128>}, {transform_indices = @transform_14, window_bounds = array<i64: 8, 128>}]} {
    %c0 = arith.constant 0 : index
    %c0_0 = arith.constant 0 : index
    %0 = vector.load %arg1[%c0, %c0_0] : memref<8x32xbf16, #tpu.memory_space<vmem>>, vector<8x32xbf16>
    %c0_1 = arith.constant 0 : index
    %c0_2 = arith.constant 0 : index
    %1 = vector.load %arg3[%c0_1, %c0_2] : memref<32x128xbf16, #tpu.memory_space<vmem>>, vector<32x128xbf16>
    %cst = arith.constant dense<0.000000e+00> : vector<8x128xf32>
    %2 = tpu.matmul %0, %1, %cst {dimension_numbers = #tpu.dot_dimension_numbers<[1], [0], [0], [1], [0, 0, 1, 1], [], []>} : vector<8x32xbf16>, vector<32x128xbf16>, vector<8x128xf32> -> vector<8x128xf32>
    %c0_3 = arith.constant 0 : index
    %c0_4 = arith.constant 0 : index
    %3 = vector.load %arg4[%c0_3, %c0_4] : memref<1x128xf32, #tpu.memory_space<vmem>>, vector<1x128xf32>
    %4 = vector.broadcast %3 : vector<1x128xf32> to vector<8x128xf32>
    %5 = arith.addf %2, %4 : vector<8x128xf32>
    %c0_5 = arith.constant 0 : index
    %c0_6 = arith.constant 0 : index
    %6 = vector.load %arg2[%c0_5, %c0_6] : memref<8x32xbf16, #tpu.memory_space<vmem>>, vector<8x32xbf16>
    %c0_7 = arith.constant 0 : index
    %c0_8 = arith.constant 0 : index
    %7 = vector.load %arg5[%c0_7, %c0_8] : memref<32x128xbf16, #tpu.memory_space<vmem>>, vector<32x128xbf16>
    %cst_9 = arith.constant dense<0.000000e+00> : vector<8x128xf32>
    %8 = tpu.matmul %6, %7, %cst_9 {dimension_numbers = #tpu.dot_dimension_numbers<[1], [0], [0], [1], [0, 0, 1, 1], [], []>} : vector<8x32xbf16>, vector<32x128xbf16>, vector<8x128xf32> -> vector<8x128xf32>
    %c0_10 = arith.constant 0 : index
    %c0_11 = arith.constant 0 : index
    %9 = vector.load %arg6[%c0_10, %c0_11] : memref<1x128xf32, #tpu.memory_space<vmem>>, vector<1x128xf32>
    %10 = vector.broadcast %9 : vector<1x128xf32> to vector<8x128xf32>
    %11 = arith.addf %8, %10 : vector<8x128xf32>
    %12 = tpu.concatenate %5, %11 in 1 : vector<8x128xf32>, vector<8x128xf32> -> vector<8x256xf32>
    %13 = arith.truncf %12 : vector<8x256xf32> to vector<8x256xbf16>
    %c0_12 = arith.constant 0 : index
    %c0_13 = arith.constant 0 : index
    %14 = vector.load %arg7[%c0_12, %c0_13] : memref<256x128xbf16, #tpu.memory_space<vmem>>, vector<256x128xbf16>
    %cst_14 = arith.constant dense<0.000000e+00> : vector<8x128xf32>
    %15 = tpu.matmul %13, %14, %cst_14 {dimension_numbers = #tpu.dot_dimension_numbers<[1], [0], [0], [1], [0, 0, 1, 1], [], []>} : vector<8x256xbf16>, vector<256x128xbf16>, vector<8x128xf32> -> vector<8x128xf32>
    %c0_15 = arith.constant 0 : index
    %c0_16 = arith.constant 0 : index
    %16 = vector.load %arg8[%c0_15, %c0_16] : memref<1x128xf32, #tpu.memory_space<vmem>>, vector<1x128xf32>
    %17 = vector.broadcast %16 : vector<1x128xf32> to vector<8x128xf32>
    %18 = arith.addf %15, %17 : vector<8x128xf32>
    %19 = math.tanh %18 : vector<8x128xf32>
    %20 = arith.truncf %19 : vector<8x128xf32> to vector<8x128xbf16>
    %c0_17 = arith.constant 0 : index
    %c0_18 = arith.constant 0 : index
    %21 = vector.load %arg9[%c0_17, %c0_18] : memref<128x128xbf16, #tpu.memory_space<vmem>>, vector<128x128xbf16>
    %cst_19 = arith.constant dense<0.000000e+00> : vector<8x128xf32>
    %22 = tpu.matmul %20, %21, %cst_19 {dimension_numbers = #tpu.dot_dimension_numbers<[1], [0], [0], [1], [0, 0, 1, 1], [], []>} : vector<8x128xbf16>, vector<128x128xbf16>, vector<8x128xf32> -> vector<8x128xf32>
    %c0_20 = arith.constant 0 : index
    %c0_21 = arith.constant 0 : index
    %23 = vector.load %arg10[%c0_20, %c0_21] : memref<1x128xf32, #tpu.memory_space<vmem>>, vector<1x128xf32>
    %24 = vector.broadcast %23 : vector<1x128xf32> to vector<8x128xf32>
    %25 = arith.addf %22, %24 : vector<8x128xf32>
    %26 = math.tanh %25 : vector<8x128xf32>
    %27 = arith.truncf %26 : vector<8x128xf32> to vector<8x128xbf16>
    %c0_22 = arith.constant 0 : index
    %c0_23 = arith.constant 0 : index
    %28 = vector.load %arg11[%c0_22, %c0_23] : memref<128x128xbf16, #tpu.memory_space<vmem>>, vector<128x128xbf16>
    %cst_24 = arith.constant dense<0.000000e+00> : vector<8x128xf32>
    %29 = tpu.matmul %27, %28, %cst_24 {dimension_numbers = #tpu.dot_dimension_numbers<[1], [0], [0], [1], [0, 0, 1, 1], [], []>} : vector<8x128xbf16>, vector<128x128xbf16>, vector<8x128xf32> -> vector<8x128xf32>
    %c0_25 = arith.constant 0 : index
    %c0_26 = arith.constant 0 : index
    %30 = vector.load %arg12[%c0_25, %c0_26] : memref<1x128xf32, #tpu.memory_space<vmem>>, vector<1x128xf32>
    %31 = vector.broadcast %30 : vector<1x128xf32> to vector<8x128xf32>
    %32 = arith.addf %29, %31 : vector<8x128xf32>
    %33 = math.tanh %32 : vector<8x128xf32>
    %34 = arith.truncf %33 : vector<8x128xf32> to vector<8x128xbf16>
    %c0_27 = arith.constant 0 : index
    %c0_28 = arith.constant 0 : index
    %35 = vector.load %arg13[%c0_27, %c0_28] : memref<128x128xbf16, #tpu.memory_space<vmem>>, vector<128x128xbf16>
    %cst_29 = arith.constant dense<0.000000e+00> : vector<8x128xf32>
    %36 = tpu.matmul %34, %35, %cst_29 {dimension_numbers = #tpu.dot_dimension_numbers<[1], [0], [0], [1], [0, 0, 1, 1], [], []>} : vector<8x128xbf16>, vector<128x128xbf16>, vector<8x128xf32> -> vector<8x128xf32>
    %c0_30 = arith.constant 0 : index
    %c0_31 = arith.constant 0 : index
    %37 = vector.load %arg14[%c0_30, %c0_31] : memref<1x128xf32, #tpu.memory_space<vmem>>, vector<1x128xf32>
    %38 = vector.broadcast %37 : vector<1x128xf32> to vector<8x128xf32>
    %39 = arith.addf %36, %38 : vector<8x128xf32>
    %40 = tpu.iota {dimensions = array<i32: 1>} : vector<8x128xi32>
    %cst_32 = arith.constant 0.000000e+00 : f32
    %41 = vector.broadcast %cst_32 : f32 to vector<8x128xf32>
    %42 = arith.maximumf %39, %41 : vector<8x128xf32>
    %43 = vector.broadcast %cst_32 : f32 to vector<8x128xf32>
    %44 = arith.subf %39, %43 : vector<8x128xf32>
    %45 = arith.cmpf one, %44, %44 : vector<8x128xf32>
    %46 = vector.broadcast %cst_32 : f32 to vector<8x128xf32>
    %47 = arith.addf %39, %46 : vector<8x128xf32>
    %48 = math.absf %44 : vector<8x128xf32>
    %cst_33 = arith.constant 0.000000e+00 : f32
    %49 = vector.broadcast %cst_33 : f32 to vector<8x128xf32>
    %50 = arith.subf %49, %48 : vector<8x128xf32>
    %51 = math.exp %50 : vector<8x128xf32>
    %52 = math.log1p %51 : vector<8x128xf32>
    %53 = arith.addf %42, %52 : vector<8x128xf32>
    %54 = arith.select %45, %47, %53 : vector<8x128xi1>, vector<8x128xf32>
    %cst_34 = arith.constant 9.99999974E-6 : f32
    %55 = vector.broadcast %cst_34 : f32 to vector<8x128xf32>
    %56 = arith.addf %54, %55 : vector<8x128xf32>
    %c16_i32 = arith.constant 16 : i32
    %57 = vector.broadcast %c16_i32 : i32 to vector<8x128xi32>
    %58 = arith.cmpi sge, %40, %57 : vector<8x128xi32>
    %59 = arith.select %58, %56, %39 : vector<8x128xi1>, vector<8x128xf32>
    %c0_35 = arith.constant 0 : index
    %c0_36 = arith.constant 0 : index
    %60 = vector.load %arg15[%c0_35, %c0_36] : memref<8x128xf32, #tpu.memory_space<vmem>>, vector<8x128xf32>
    tpu.vector_store %arg15[%c0_35, %c0_36], %59 {strides = array<i32>} : memref<8x128xf32, #tpu.memory_space<vmem>>, vector<8x128xf32>,
    return
  }
  func.func @transform_0(%arg0: i32) -> (i32, i32) {
    %c0_i32 = arith.constant 0 : i32
    %c0_i32_0 = arith.constant 0 : i32
    return %arg0, %c0_i32 : i32, i32
  }
  func.func @transform_1(%arg0: i32) -> (i32, i32) {
    %c0_i32 = arith.constant 0 : i32
    %c0_i32_0 = arith.constant 0 : i32
    return %arg0, %c0_i32 : i32, i32
  }
  func.func @transform_2(%arg0: i32) -> (i32, i32) {
    %c0_i32 = arith.constant 0 : i32
    %c0_i32_0 = arith.constant 0 : i32
    %c0_i32_1 = arith.constant 0 : i32
    return %c0_i32, %c0_i32_0 : i32, i32
  }
  func.func @transform_3(%arg0: i32) -> (i32, i32) {
    %c0_i32 = arith.constant 0 : i32
    %c0_i32_0 = arith.constant 0 : i32
    %c0_i32_1 = arith.constant 0 : i32
    return %c0_i32, %c0_i32_0 : i32, i32
  }
  func.func @transform_4(%arg0: i32) -> (i32, i32) {
    %c0_i32 = arith.constant 0 : i32
    %c0_i32_0 = arith.constant 0 : i32
    %c0_i32_1 = arith.constant 0 : i32
    return %c0_i32, %c0_i32_0 : i32, i32
  }
  func.func @transform_5(%arg0: i32) -> (i32, i32) {
    %c0_i32 = arith.constant 0 : i32
    %c0_i32_0 = arith.constant 0 : i32
    %c0_i32_1 = arith.constant 0 : i32
    return %c0_i32, %c0_i32_0 : i32, i32
  }
  func.func @transform_6(%arg0: i32) -> (i32, i32) {
    %c0_i32 = arith.constant 0 : i32
    %c0_i32_0 = arith.constant 0 : i32
    %c0_i32_1 = arith.constant 0 : i32
    return %c0_i32, %c0_i32_0 : i32, i32
  }
  func.func @transform_7(%arg0: i32) -> (i32, i32) {
    %c0_i32 = arith.constant 0 : i32
    %c0_i32_0 = arith.constant 0 : i32
    %c0_i32_1 = arith.constant 0 : i32
    return %c0_i32, %c0_i32_0 : i32, i32
  }
  func.func @transform_8(%arg0: i32) -> (i32, i32) {
    %c0_i32 = arith.constant 0 : i32
    %c0_i32_0 = arith.constant 0 : i32
    %c0_i32_1 = arith.constant 0 : i32
    return %c0_i32, %c0_i32_0 : i32, i32
  }
  func.func @transform_9(%arg0: i32) -> (i32, i32) {
    %c0_i32 = arith.constant 0 : i32
    %c0_i32_0 = arith.constant 0 : i32
    %c0_i32_1 = arith.constant 0 : i32
    return %c0_i32, %c0_i32_0 : i32, i32
  }
  func.func @transform_10(%arg0: i32) -> (i32, i32) {
    %c0_i32 = arith.constant 0 : i32
    %c0_i32_0 = arith.constant 0 : i32
    %c0_i32_1 = arith.constant 0 : i32
    return %c0_i32, %c0_i32_0 : i32, i32
  }
  func.func @transform_11(%arg0: i32) -> (i32, i32) {
    %c0_i32 = arith.constant 0 : i32
    %c0_i32_0 = arith.constant 0 : i32
    %c0_i32_1 = arith.constant 0 : i32
    return %c0_i32, %c0_i32_0 : i32, i32
  }
  func.func @transform_12(%arg0: i32) -> (i32, i32) {
    %c0_i32 = arith.constant 0 : i32
    %c0_i32_0 = arith.constant 0 : i32
    %c0_i32_1 = arith.constant 0 : i32
    return %c0_i32, %c0_i32_0 : i32, i32
  }
  func.func @transform_13(%arg0: i32) -> (i32, i32) {
    %c0_i32 = arith.constant 0 : i32
    %c0_i32_0 = arith.constant 0 : i32
    %c0_i32_1 = arith.constant 0 : i32
    return %c0_i32, %c0_i32_0 : i32, i32
  }
  func.func @transform_14(%arg0: i32) -> (i32, i32) {
    %c0_i32 = arith.constant 0 : i32
    %c0_i32_0 = arith.constant 0 : i32
    return %arg0, %c0_i32 : i32, i32
  }
}

</mosaic_0001>

<bundles_post_ra>
// kernel: policy_or_value_network.1
= control target key start
LH: loop header
LB: loop body
LE: loop exit
PB: predicated region body
PF: predicated region fallthrough
CT: control target
= control target key end

     0   :  { %19 = vsyncpa [#allocation3], 0  ;;  %s1654_s0 = inlined_call_operand.vmem [shape: bf16[8,32], index: 0, kind: input, shape index: {}]   ;;  %s1655_s1 = inlined_call_operand.vmem [shape: bf16[8,32], index: 1, kind: input, shape index: {}]   ;;  %s1656_s2 = inlined_call_operand.hbm [shape: bf16[32,128], index: 2, kind: input, shape index: {}]   ;;  %s1657_s3 = inlined_call_operand.vmem [shape: f32[1,128], index: 3, kind: input, shape index: {}]   ;;  %s1658_s4 = inlined_call_operand.hbm [shape: bf16[32,128], index: 4, kind: input, shape index: {}]   ;;  %s1659_s5 = inlined_call_operand.hbm [shape: f32[1,128], index: 5, kind: input, shape index: {}]   ;;  %s1660_s6 = inlined_call_operand.hbm [shape: bf16[256,128], index: 6, kind: input, shape index: {}]   ;;  %s1661_s7 = inlined_call_operand.hbm [shape: f32[1,128], index: 7, kind: input, shape index: {}]   ;;  %s1662_s8 = inlined_call_operand.hbm [shape: bf16[128,128], index: 8, kind: input, shape index: {}]   ;;  %s1663_s9 = inlined_call_operand.hbm [shape: f32[1,128], index: 9, kind: input, shape index: {}]   ;;  %s1664_s10 = inlined_call_operand.hbm [shape: bf16[128,128], index: 10, kind: input, shape index: {}]   ;;  %s1665_s11 = inlined_call_operand.hbm [shape: f32[1,128], index: 11, kind: input, shape index: {}]   ;;  %s1666_s12 = inlined_call_operand.vmem [shape: bf16[128,128], index: 12, kind: input, shape index: {}]   ;;  %s1667_s13 = inlined_call_operand.hbm [shape: f32[1,128], index: 13, kind: input, shape index: {}]   ;;  %s1668_s14 = inlined_call_operand.vmem [shape: f32[8,128], index: 14, kind: output, shape index: {}]  }
   0x1   :  { %20 = vsyncpa [#allocation5], 0 }
   0x2   :  { %21 = vsyncpa [#allocation8], 0 }
   0x3   :  { %22 = vsyncpa [#allocation11], 0 }
   0x4   :  { %23 = vsyncpa [#allocation14], 0 }
   0x5   :  { %24 = vsyncpa [#allocation17], 0  ;;  %s1342_s29 = smov [#allocation4]   ;;  %s1343_s15 = smov [#allocation7]  }
   0x6   :  { %s48_s30 = sshll.u32 %s1342_s29, 4  ;;  %s70_s16 = sshll.u32 %s1343_s15, 4  ;;  %s49_s30 = int_to_ptr.vmem [resolvable:$true] %s48_s30  ;;  %s1431_s16 = int_to_ptr.vmem [resolvable:$true] %s70_s16 }
   0x7   :  { %s1110_s19 = scalar_lea.hbm %s1658_s4, 256 }
   0x8   :  { %p1111_p0 = scmp.ne.s32.totalorder %s1658_s4, %s1110_s19  ;;  %p1114_p1 = scmp.lt.u32.totalorder %s1110_s19, %s1658_s4 }
   0xa   :  { %p1116_p2 = pnand %p1114_p1, %p1111_p0 }
   0xc   :  { %1119 = shalt.err (!%p1116_p2)
}
   0xd   :  { %s1120_s24 = scalar_lea.vmem %s49_s30, 256  ;;  %p1125_p4 = scmp.lt.s32.totalorder %s49_s30, %s49_s30 }
   0xe   :  { %p1121_p3 = scmp.ne.s32.totalorder %s49_s30, %s1120_s24  ;;  %p1126_p5 = scmp.lt.s32.totalorder %s1120_s24, %s1120_s24 }
  0x10   :  { %p1127_p6 = por %p1126_p5, %p1125_p4 }
  0x12   :  { %p1128_p7 = pnand %p1127_p6, %p1121_p3 }
  0x14   :  { %1131 = shalt.err (!%p1128_p7)
}
  0x15   :  { %s1344_s25 = smov 64   ;;  %s1345_s26 = smov 4  }
  0x16   :  { %54 = dma.hbm_to_vmem [thread:$0]  %s1658_s4, 256, %s49_s30, [#allocation5], %s1344_s25, %s1344_s25, %s1345_s26  }
  0x17   :  { %s1132_s17 = scalar_lea.hbm %s1660_s6, 2048 }
  0x18   :  { %p1133_p8 = scmp.ne.s32.totalorder %s1660_s6, %s1132_s17  ;;  %p1136_p9 = scmp.lt.u32.totalorder %s1132_s17, %s1660_s6 }
  0x1a   :  { %p1138_p10 = pnand %p1136_p9, %p1133_p8 }
  0x1c   :  { %1141 = shalt.err (!%p1138_p10)
}
  0x1d   :  { %s1142_s22 = scalar_lea.vmem %s1431_s16, 2048  ;;  %p1147_p12 = scmp.lt.s32.totalorder %s1431_s16, %s1431_s16 }
  0x1e   :  { %p1143_p11 = scmp.ne.s32.totalorder %s1431_s16, %s1142_s22  ;;  %p1148_p13 = scmp.lt.s32.totalorder %s1142_s22, %s1142_s22 }
  0x20   :  { %p1149_p0 = por %p1148_p13, %p1147_p12 }
  0x22   :  { %p1150_p1 = pnand %p1149_p0, %p1143_p11 }
  0x24   :  { %1153 = shalt.err (!%p1150_p1)
}
  0x25   :  { %76 = dma.hbm_to_vmem [thread:$0]  %s1660_s6, 2048, %s1431_s16, [#allocation8], %s1344_s25, %s1344_s25, %s1345_s26  }
  0x26   :  { %s1346_s23 = smov [#allocation10]   ;;  %s1347_s27 = smov [#allocation13]  }
  0x27   :  { %s92_s24 = sshll.u32 %s1346_s23, 4  ;;  %s114_s28 = sshll.u32 %s1347_s27, 4  ;;  %s93_s24 = int_to_ptr.vmem [resolvable:$true] %s92_s24  ;;  %s1468_s28 = int_to_ptr.vmem [resolvable:$true] %s114_s28 }
  0x28   :  { %s1154_s17 = scalar_lea.hbm %s1662_s8, 1024 }
  0x29   :  { %p1155_p2 = scmp.ne.s32.totalorder %s1662_s8, %s1154_s17  ;;  %p1158_p3 = scmp.lt.u32.totalorder %s1154_s17, %s1662_s8 }
  0x2b   :  { %p1160_p4 = pnand %p1158_p3, %p1155_p2 }
  0x2d   :  { %1163 = shalt.err (!%p1160_p4)
}
  0x2e   :  { %s1164_s6 = scalar_lea.vmem %s93_s24, 1024  ;;  %p1169_p6 = scmp.lt.s32.totalorder %s93_s24, %s93_s24 }
  0x2f   :  { %p1165_p5 = scmp.ne.s32.totalorder %s93_s24, %s1164_s6  ;;  %p1170_p7 = scmp.lt.s32.totalorder %s1164_s6, %s1164_s6 }
  0x31   :  { %p1171_p8 = por %p1170_p7, %p1169_p6 }
  0x33   :  { %p1172_p9 = pnand %p1171_p8, %p1165_p5 }
  0x35   :  { %1175 = shalt.err (!%p1172_p9)
}
  0x36   :  { %98 = dma.hbm_to_vmem [thread:$0]  %s1662_s8, 1024, %s93_s24, [#allocation11], %s1344_s25, %s1344_s25, %s1345_s26  }
  0x37   :  { %s1176_s23 = scalar_lea.hbm %s1664_s10, 1024 }
  0x38   :  { %p1177_p10 = scmp.ne.s32.totalorder %s1664_s10, %s1176_s23  ;;  %p1180_p11 = scmp.lt.u32.totalorder %s1176_s23, %s1664_s10 }
  0x3a   :  { %p1182_p12 = pnand %p1180_p11, %p1177_p10 }
  0x3c   :  { %1185 = shalt.err (!%p1182_p12)
}
  0x3d   :  { %s1186_s18 = scalar_lea.vmem %s1468_s28, 1024  ;;  %p1191_p0 = scmp.lt.s32.totalorder %s1468_s28, %s1468_s28 }
  0x3e   :  { %p1187_p13 = scmp.ne.s32.totalorder %s1468_s28, %s1186_s18  ;;  %p1192_p1 = scmp.lt.s32.totalorder %s1186_s18, %s1186_s18 }
  0x40   :  { %p1193_p2 = por %p1192_p1, %p1191_p0 }
  0x42   :  { %p1194_p3 = pnand %p1193_p2, %p1187_p13 }
  0x44   :  { %1197 = shalt.err (!%p1194_p3)
}
  0x45   :  { %120 = dma.hbm_to_vmem [thread:$0]  %s1664_s10, 1024, %s1468_s28, [#allocation14], %s1344_s25, %s1344_s25, %s1345_s26  }
  0x46   :  { %s1348_s19 = smov [#allocation2]   ;;  %s1349_s21 = smov [#allocation6]  }
  0x47   :  { %s34_s20 = sshll.u32 %s1348_s19, 4  ;;  %s61_s6 = sshll.u32 %s1349_s21, 4  ;;  %s35_s20 = int_to_ptr.vmem [resolvable:$true] %s34_s20  ;;  %s62_s6 = int_to_ptr.vmem [resolvable:$true] %s61_s6 }
  0x48   :  { %s1198_s4 = scalar_lea.hbm %s1656_s2, 256 }
  0x49   :  { %p1199_p4 = scmp.ne.s32.totalorder %s1656_s2, %s1198_s4  ;;  %p1202_p5 = scmp.lt.u32.totalorder %s1198_s4, %s1656_s2 }
  0x4b   :  { %p1204_p6 = pnand %p1202_p5, %p1199_p4 }
  0x4d   :  { %1207 = shalt.err (!%p1204_p6)
}
  0x4e   :  { %s1208_s10 = scalar_lea.vmem %s35_s20, 256  ;;  %p1213_p8 = scmp.lt.s32.totalorder %s35_s20, %s35_s20 }
  0x4f   :  { %p1209_p7 = scmp.ne.s32.totalorder %s35_s20, %s1208_s10  ;;  %p1214_p9 = scmp.lt.s32.totalorder %s1208_s10, %s1208_s10 }
  0x51   :  { %p1215_p10 = por %p1214_p9, %p1213_p8 }
  0x53   :  { %p1216_p11 = pnand %p1215_p10, %p1209_p7 }
  0x55   :  { %1219 = shalt.err (!%p1216_p11)
}
  0x56   :  { %40 = dma.hbm_to_vmem [thread:$0]  %s1656_s2, 256, %s35_s20, [#allocation3], %s1344_s25, %s1344_s25, %s1345_s26  }
  0x57   :  { %s1220_s8 = scalar_lea.hbm %s1659_s5, 16 }
  0x58   :  { %p1221_p12 = scmp.ne.s32.totalorder %s1659_s5, %s1220_s8  ;;  %p1224_p13 = scmp.lt.u32.totalorder %s1220_s8, %s1659_s5 }
  0x5a   :  { %p1226_p0 = pnand %p1224_p13, %p1221_p12 }
  0x5c   :  { %1229 = shalt.err (!%p1226_p0)
}
  0x5d   :  { %s1230_s22 = scalar_lea.vmem %s62_s6, 16  ;;  %s1234_s4 = scalar_lea.vmem %s62_s6, 32 }
  0x5e   :  { %p1231_p1 = scmp.ne.s32.totalorder %s62_s6, %s1230_s22  ;;  %p1235_p2 = scmp.lt.s32.totalorder %s62_s6, %s62_s6 }
  0x5f   :  { %p1236_p3 = scmp.lt.s32.totalorder %s1234_s4, %s1230_s22 }
  0x61   :  { %p1237_p4 = por %p1236_p3, %p1235_p2 }
  0x63   :  { %p1238_p5 = pnand %p1237_p4, %p1231_p1 }
  0x65   :  { %1241 = shalt.err (!%p1238_p5)
}
  0x66   :  { %64 = dma.hbm_to_vmem [thread:$0]  %s1659_s5, 16, %s62_s6, [#allocation5]  }
  0x67   :  { %s1350_s26 = smov [#allocation9]   ;;  %s1351_s30 = smov [#allocation12]  }
  0x68   :  { %s83_s20 = sshll.u32 %s1350_s26, 4  ;;  %s105_s23 = sshll.u32 %s1351_s30, 4  ;;  %s84_s20 = int_to_ptr.vmem [resolvable:$true] %s83_s20  ;;  %s106_s23 = int_to_ptr.vmem [resolvable:$true] %s105_s23 }
  0x69   :  { %s1242_s10 = scalar_lea.hbm %s1661_s7, 16 }
  0x6a   :  { %p1243_p6 = scmp.ne.s32.totalorder %s1661_s7, %s1242_s10  ;;  %p1246_p7 = scmp.lt.u32.totalorder %s1242_s10, %s1661_s7 }
  0x6c   :  { %p1248_p8 = pnand %p1246_p7, %p1243_p6 }
  0x6e   :  { %1251 = shalt.err (!%p1248_p8)
}
  0x6f   :  { %s1252_s5 = scalar_lea.vmem %s84_s20, 16  ;;  %s1256_s6 = scalar_lea.vmem %s84_s20, 32 }
  0x70   :  { %p1253_p9 = scmp.ne.s32.totalorder %s84_s20, %s1252_s5  ;;  %p1257_p10 = scmp.lt.s32.totalorder %s84_s20, %s84_s20 }
  0x71   :  { %p1258_p11 = scmp.lt.s32.totalorder %s1256_s6, %s1252_s5 }
  0x73   :  { %p1259_p12 = por %p1258_p11, %p1257_p10 }
  0x75   :  { %p1260_p13 = pnand %p1259_p12, %p1253_p9 }
  0x77   :  { %1263 = shalt.err (!%p1260_p13)
}
  0x78   :  { %86 = dma.hbm_to_vmem [thread:$0]  %s1661_s7, 16, %s84_s20, [#allocation8]  }
  0x79   :  { %s1264_s16 = scalar_lea.hbm %s1663_s9, 16 }
  0x7a   :  { %p1265_p0 = scmp.ne.s32.totalorder %s1663_s9, %s1264_s16  ;;  %p1268_p1 = scmp.lt.u32.totalorder %s1264_s16, %s1663_s9 }
  0x7c   :  { %p1270_p2 = pnand %p1268_p1, %p1265_p0 }
  0x7e   :  { %1273 = shalt.err (!%p1270_p2)
}
  0x7f   :  { %s1274_s26 = scalar_lea.vmem %s106_s23, 16  ;;  %s1278_s30 = scalar_lea.vmem %s106_s23, 32 }
  0x80   :  { %p1275_p3 = scmp.ne.s32.totalorder %s106_s23, %s1274_s26  ;;  %p1279_p4 = scmp.lt.s32.totalorder %s106_s23, %s106_s23 }
  0x81   :  { %p1280_p5 = scmp.lt.s32.totalorder %s1278_s30, %s1274_s26 }
  0x83   :  { %p1281_p6 = por %p1280_p5, %p1279_p4 }
  0x85   :  { %p1282_p7 = pnand %p1281_p6, %p1275_p3 }
  0x87   :  { %1285 = shalt.err (!%p1282_p7)
}
  0x88   :  { %108 = dma.hbm_to_vmem [thread:$0]  %s1663_s9, 16, %s106_s23, [#allocation11]  }
  0x89   :  { %s1352_s27 = smov [#allocation15]   ;;  %s1353_s10 = smov [#allocation16]  }
  0x8a   :  { %s127_s29 = sshll.u32 %s1352_s27, 4  ;;  %s139_s28 = sshll.u32 %s1353_s10, 4  ;;  %s128_s29 = int_to_ptr.vmem [resolvable:$true] %s127_s29  ;;  %s140_s28 = int_to_ptr.vmem [resolvable:$true] %s139_s28 }
  0x8b   :  { %s1286_s18 = scalar_lea.hbm %s1665_s11, 16 }
  0x8c   :  { %p1287_p8 = scmp.ne.s32.totalorder %s1665_s11, %s1286_s18  ;;  %p1290_p9 = scmp.lt.u32.totalorder %s1286_s18, %s1665_s11 }
  0x8e   :  { %p1292_p10 = pnand %p1290_p9, %p1287_p8 }
  0x90   :  { %1295 = shalt.err (!%p1292_p10)
}
  0x91   :  { %s1296_s9 = scalar_lea.vmem %s128_s29, 16  ;;  %s1300_s23 = scalar_lea.vmem %s128_s29, 32 }
  0x92   :  { %p1297_p11 = scmp.ne.s32.totalorder %s128_s29, %s1296_s9  ;;  %p1301_p12 = scmp.lt.s32.totalorder %s128_s29, %s128_s29 }
  0x93   :  { %p1302_p13 = scmp.lt.s32.totalorder %s1300_s23, %s1296_s9 }
  0x95   :  { %p1303_p0 = por %p1302_p13, %p1301_p12 }
  0x97   :  { %p1304_p1 = pnand %p1303_p0, %p1297_p11 }
  0x99   :  { %1307 = shalt.err (!%p1304_p1)
}
  0x9a   :  { %130 = dma.hbm_to_vmem [thread:$0]  %s1665_s11, 16, %s128_s29, [#allocation14]  }
  0x9b   :  { %s1308_s4 = scalar_lea.hbm %s1667_s13, 16 }
  0x9c   :  { %p1309_p2 = scmp.ne.s32.totalorder %s1667_s13, %s1308_s4  ;;  %p1312_p3 = scmp.lt.u32.totalorder %s1308_s4, %s1667_s13 }
  0x9e   :  { %p1314_p4 = pnand %p1312_p3, %p1309_p2 }
  0xa0   :  { %1317 = shalt.err (!%p1314_p4)
}
  0xa1   :  { %s1318_s7 = scalar_lea.vmem %s140_s28, 16  ;;  %s1322_s20 = scalar_lea.vmem %s140_s28, 32 }
  0xa2   :  { %p1319_p5 = scmp.ne.s32.totalorder %s140_s28, %s1318_s7  ;;  %p1323_p6 = scmp.lt.s32.totalorder %s140_s28, %s140_s28 }
  0xa3   :  { %p1324_p7 = scmp.lt.s32.totalorder %s1322_s20, %s1318_s7 }
  0xa5   :  { %p1325_p8 = por %p1324_p7, %p1323_p6 }
  0xa7   :  { %p1326_p9 = pnand %p1325_p8, %p1319_p5 }
  0xa9   :  { %1329 = shalt.err (!%p1326_p9)
}
  0xaa   :  { %142 = dma.hbm_to_vmem [thread:$0]  %s1667_s13, 16, %s140_s28, [#allocation17]  }
  0xab   :  { %1330 = dma.done.wait [#allocation3], 256  }
  0xac   :  { %1331 = vsyncadd [#allocation3], 4294967040 }
  0xad   :  { %1332 = dma.done.wait [#allocation5], 272  }
  0xae   :  { %1333 = vsyncadd [#allocation5], 4294967024 }
  0xaf   :  { %1334 = dma.done.wait [#allocation8], 2064  }
  0xb0   :  { %1335 = vsyncadd [#allocation8], 4294965232 }
  0xb1   :  { %1336 = dma.done.wait [#allocation11], 1040  }
  0xb2   :  { %1337 = vsyncadd [#allocation11], 4294966256 }
  0xb3   :  { %1338 = dma.done.wait [#allocation14], 1040  }
  0xb4   :  { %1339 = vsyncadd [#allocation14], 4294966256 }
  0xb5   :  { %1340 = dma.done.wait [#allocation17], 16  }
  0xb6   :  { %1341 = vsyncadd [#allocation17], 4294967280  ;;  %v1354_v0 = vmov 0.0   ;;  %vm1355_vm0 = vmmov 0   ;;  %v1056_v1 = vld [vmem:[#allocation2] sm:$0xff]   ;;  %v1057_v2 = vld [vmem:[#allocation4] sm:$0xff]  }
  0xb7   :  { %966 = vmatprep.subr.bf16.mxu0 %v1354_v0  ;;  %974 = vmatprep.subr.bf16.mxu1 %v1354_v0  ;;  %v1058_v3 = vld [vmem:[#allocation2 + $0x8] sm:$0xff]   ;;  %v1059_v4 = vld [vmem:[#allocation4 + $0x8] sm:$0xff]   ;;  %vm198_vm1 = vcmask 261120   ;;  %v863_v27 = vld [vmem:[#allocation6] ss:$0 sm:$0xff] }
  0xb8   :  { %970 = vmatprep.mubr.msk.bf16.mxu0 %vm1355_vm0, %v1354_v0  ;;  %978 = vmatprep.mubr.msk.bf16.mxu1 %vm1355_vm0, %v1354_v0  ;;  %v174_v5 = vld [vmem:[%s1654_s0] sm:$0xf]  ;;  %v1060_v7 = vld [vmem:[#allocation7 + $0x40] sm:$0xff]   ;;  %v1062_v9 = vld [vmem:[#allocation7 + $0x48] sm:$0xff]  }
  0xb9   :  { %967 = vmatpush3.bf16.msra.mxu0 %v1056_v1  ;;  %975 = vmatpush3.bf16.msra.mxu1 %v1057_v2  ;;  %v242_v6 = vld [vmem:[%s1655_s1] sm:$0xf]  ;;  %v1061_v8 = vld [vmem:[#allocation7] sm:$0xff]   ;;  %v1063_v10 = vld [vmem:[#allocation7 + $0x8] sm:$0xff]  }
  0xba   :  { %968 = vmatprep.subr.bf16.mxu0 %v1354_v0  ;;  %976 = vmatprep.subr.bf16.mxu1 %v1354_v0  ;;  %v1064_v11 = vld [vmem:[#allocation7 + $0x50] sm:$0xff]   ;;  %v1066_v13 = vld [vmem:[#allocation7 + $0x58] sm:$0xff]   ;;  %v1068_v15 = vld [vmem:[#allocation7 + $0x60] sm:$0xff]  }
  0xbb   :  { %v1065_v12 = vld [vmem:[#allocation7 + $0x10] sm:$0xff]   ;;  %v1067_v14 = vld [vmem:[#allocation7 + $0x18] sm:$0xff]   ;;  %v1069_v16 = vld [vmem:[#allocation7 + $0x20] sm:$0xff]  }
  0xbc   :  { %v1070_v17 = vld [vmem:[#allocation7 + $0x68] sm:$0xff]   ;;  %v1072_v19 = vld [vmem:[#allocation7 + $0x70] sm:$0xff]   ;;  %v1074_v21 = vld [vmem:[#allocation7 + $0x78] sm:$0xff]  }
  0xbd   :  { %969 = vmatpush3.bf16.msra.mxu0 %v1058_v3  ;;  %977 = vmatpush3.bf16.msra.mxu1 %v1059_v4  ;;  %v1071_v18 = vld [vmem:[#allocation7 + $0x28] sm:$0xff]   ;;  %v1073_v20 = vld [vmem:[#allocation7 + $0x30] sm:$0xff]   ;;  %v1075_v22 = vld [vmem:[#allocation7 + $0x38] sm:$0xff]  }
  0xbe   :  { %917 = vmatprep.subr.bf16.mxu0 %v1060_v7  ;;  %982 = vmatprep.subr.bf16.mxu1 %v1354_v0  ;;  %v1076_v23 = vld [vmem:[#allocation10] sm:$0xff]   ;;  %v1077_v24 = vld [vmem:[#allocation10 + $0x8] sm:$0xff]   ;;  %v1078_v25 = vld [vmem:[#allocation10 + $0x10] sm:$0xff]  }
  0xbf   :  { %v859_v26 = vld [vmem:[%s1657_s3] ss:$0 sm:$0xff]  ;;  %v1079_v40 = vld [vmem:[#allocation10 + $0x18] sm:$0xff]   ;;  %v1080_v41 = vld [vmem:[#allocation10 + $0x20] sm:$0xff]  }
  0xc0   :  { %971 = vmatmul.mubr.msk.bf16.vlgmr.msra.gmra.mrb[0].mxu0 %vm198_vm1, %v174_v5  ;;  %979 = vmatmul.mubr.msk.bf16.vlgmr.msra.gmra.mrb[0].mxu1 %vm198_vm1, %v242_v6  ;;  %v1081_v42 = vld [vmem:[#allocation10 + $0x28] sm:$0xff]   ;;  %v1082_v43 = vld [vmem:[#allocation10 + $0x30] sm:$0xff]   ;;  %v1083_v44 = vld [vmem:[#allocation10 + $0x38] sm:$0xff]  }
  0xc1   :  { %918 = vmatpush3.bf16.msra.mxu0 %v1061_v8  ;;  %998 = vmatprep.mubr.msk.bf16.mxu1 %vm1355_vm0, %v1354_v0  ;;  %v1084_v45 = vld [vmem:[#allocation13] sm:$0xff]   ;;  %v1085_v46 = vld [vmem:[#allocation13 + $0x8] sm:$0xff]   ;;  %v1086_v47 = vld [vmem:[#allocation13 + $0x10] sm:$0xff]  }
  0xc2   :  { %919 = vmatprep.subr.bf16.mxu0 %v1062_v9  ;;  %983 = vmatpush3.bf16.msra.mxu1 %v1076_v23  ;;  %v1087_v48 = vld [vmem:[#allocation13 + $0x18] sm:$0xff]   ;;  %v1088_v58 = vld [vmem:[#allocation13 + $0x20] sm:$0xff]   ;;  %v1089_v59 = vld [vmem:[#allocation13 + $0x28] sm:$0xff]  }
  0xc3   :  { %984 = vmatprep.subr.bf16.mxu1 %v1354_v0  ;;  %v867_v50 = vld [vmem:[#allocation9] ss:$0 sm:$0xff]  ;;  %v1090_v60 = vld [vmem:[#allocation13 + $0x30] sm:$0xff]   ;;  %v1094_v1 = vld [vmem:[%s1666_s12 + $0x10] sm:$0xff]  }
  0xc4   :  { %v1091_v61 = vld [vmem:[#allocation13 + $0x38] sm:$0xff]   ;;  %v1095_v2 = vld [vmem:[%s1666_s12 + $0x18] sm:$0xff]   ;;  %v902_v23 = vld [vmem:[#allocation16] ss:$0 sm:$0xff] }
  0xc5   :  { %920 = vmatpush3.bf16.msra.mxu0 %v1063_v10  ;;  %v1092_v62 = vld [vmem:[%s1666_s12] sm:$0xff]   ;;  %v1093_v63 = vld [vmem:[%s1666_s12 + $0x8] sm:$0xff]  }
  0xc6   :  { %921 = vmatprep.subr.bf16.mxu0 %v1064_v11  ;;  %985 = vmatpush3.bf16.msra.mxu1 %v1077_v24  ;;  %v884_v3 = vld [vmem:[#allocation12] ss:$0 sm:$0xff]  ;;  %v1096_v11 = vld [vmem:[%s1666_s12 + $0x20] sm:$0xff]  }
  0xc7   :  { %986 = vmatprep.subr.bf16.mxu1 %v1354_v0 }
  0xc9   :  { %922 = vmatpush3.bf16.msra.mxu0 %v1065_v12  ;;  %v1097_v12 = vld [vmem:[%s1666_s12 + $0x28] sm:$0xff]  }
  0xca   :  { %923 = vmatprep.subr.bf16.mxu0 %v1066_v13  ;;  %987 = vmatpush3.bf16.msra.mxu1 %v1078_v25  ;;  %v1098_v13 = vld [vmem:[%s1666_s12 + $0x30] sm:$0xff]  }
  0xcb   :  { %988 = vmatprep.subr.bf16.mxu1 %v1354_v0 }
  0xcd   :  { %924 = vmatpush3.bf16.msra.mxu0 %v1067_v14  ;;  %v1099_v14 = vld [vmem:[%s1666_s12 + $0x38] sm:$0xff]  }
  0xce   :  { %925 = vmatprep.subr.bf16.mxu0 %v1068_v15  ;;  %989 = vmatpush3.bf16.msra.mxu1 %v1079_v40  ;;  %v893_v15 = vld [vmem:[#allocation15] ss:$0 sm:$0xff] }
  0xcf   :  { %990 = vmatprep.subr.bf16.mxu1 %v1354_v0 }
  0xd1   :  { %926 = vmatpush3.bf16.msra.mxu0 %v1069_v16 }
  0xd2   :  { %927 = vmatprep.subr.bf16.mxu0 %v1070_v17  ;;  %991 = vmatpush3.bf16.msra.mxu1 %v1080_v41 }
  0xd3   :  { %992 = vmatprep.subr.bf16.mxu1 %v1354_v0 }
  0xd5   :  { %928 = vmatpush3.bf16.msra.mxu0 %v1071_v18 }
  0xd6   :  { %929 = vmatprep.subr.bf16.mxu0 %v1072_v19  ;;  %993 = vmatpush3.bf16.msra.mxu1 %v1081_v42 }
  0xd7   :  { %994 = vmatprep.subr.bf16.mxu1 %v1354_v0 }
  0xd9   :  { %930 = vmatpush3.bf16.msra.mxu0 %v1073_v20 }
  0xda   :  { %931 = vmatprep.subr.bf16.mxu0 %v1074_v21  ;;  %995 = vmatpush3.bf16.msra.mxu1 %v1082_v43 }
  0xdb   :  { %996 = vmatprep.subr.bf16.mxu1 %v1354_v0 }
  0xdd   :  { %932 = vmatpush3.bf16.msra.mxu0 %v1075_v22 }
  0xde   :  { %1002 = vmatprep.subr.bf16.mxu0 %v1354_v0  ;;  %997 = vmatpush3.bf16.msra.mxu1 %v1083_v44 }
  0xdf   :  { %1022 = vmatprep.subr.bf16.mxu1 %v1354_v0 }
 0x193   :  { %v236_v28 = vpop.f32.mrb[0].mxu0  ;;  %v303_v30 = vpop.f32.mrb[0].mxu1 }
 0x194   :  { %v237_v29 = vadd.f32 %v859_v26, %v236_v28  ;;  %v972_v31 = vpop.f32.mrb[1].mxu0  ;;  %v304_v32 = vadd.f32 %v863_v27, %v303_v30  ;;  %v980_v33 = vpop.f32.mrb[1].mxu1 }
 0x195   :  { %v239_v34 = vpop.f32.mrb[2].mxu0  ;;  %v306_v36 = vpop.f32.mrb[2].mxu1 }
 0x196   :  { %v309_v35 = vpack.c.bf16 %v237_v29, %v237_v29  ;;  %v973_v37 = vpop.f32.mrb[3].mxu0  ;;  %v310_v38 = vpack.c.bf16 %v304_v32, %v304_v32  ;;  %v981_v39 = vpop.f32.mrb[3].mxu1 }
 0x198   :  { %478 = vmatprep.mubr.bf16.mxu0 %v310_v38 }
 0x199   :  { %479 = vmatmul.mubr.bf16.vlgmr.msra.gmra.mrb[4].mxu0 %v309_v35  ;;  %v825_v35 = vlaneseq }
 0x19a   :  { %1018 = vmatprep.mubr.msk.bf16.mxu0 %vm1355_vm0, %v1354_v0  ;;  %1003 = vmatpush3.bf16.msra.mxu0 %v1084_v45 }
 0x19b   :  { %1004 = vmatprep.subr.bf16.mxu0 %v1354_v0  ;;  %v826_v40 = vand.u32 127, %v825_v35 }
 0x19d   :  { %vm846_vm4 = vcmp.ge.s32.totalorder %v826_v40, 16 }
 0x19e   :  { %1005 = vmatpush3.bf16.msra.mxu0 %v1085_v46 }
 0x19f   :  { %1006 = vmatprep.subr.bf16.mxu0 %v1354_v0 }
 0x1a2   :  { %1007 = vmatpush3.bf16.msra.mxu0 %v1086_v47 }
 0x1a3   :  { %1008 = vmatprep.subr.bf16.mxu0 %v1354_v0 }
 0x1a6   :  { %1009 = vmatpush3.bf16.msra.mxu0 %v1087_v48 }
 0x1a7   :  { %1010 = vmatprep.subr.bf16.mxu0 %v1354_v0 }
 0x1aa   :  { %1011 = vmatpush3.bf16.msra.mxu0 %v1088_v58 }
 0x1ab   :  { %1012 = vmatprep.subr.bf16.mxu0 %v1354_v0 }
 0x1ae   :  { %1013 = vmatpush3.bf16.msra.mxu0 %v1089_v59 }
 0x1af   :  { %1014 = vmatprep.subr.bf16.mxu0 %v1354_v0 }
 0x1b2   :  { %1015 = vmatpush3.bf16.msra.mxu0 %v1090_v60 }
 0x1b3   :  { %1016 = vmatprep.subr.bf16.mxu0 %v1354_v0 }
 0x1b6   :  { %1017 = vmatpush3.bf16.msra.mxu0 %v1091_v61 }
 0x26c   :  { %v933_v49 = vpop.f32.mrb[4].mxu0 }
 0x26d   :  { %v934_v51 = vpop.f32.mrb[5].mxu0 }
 0x26e   :  { %v935_v52 = vadd.f32 %v934_v51, %v933_v49  ;;  %v936_v53 = vpop.f32.mrb[6].mxu0 }
 0x26f   :  { %v937_v54 = vpop.f32.mrb[7].mxu0 }
 0x270   :  { %v481_v55 = vadd.f32 %v935_v52, %v867_v50 }
 0x272   :  { %1100 = vtanh.f32 %v481_v55 }
 0x27c   :  { %v1101_v56 = vpop.eup %1100 }
 0x27d   :  { %v487_v57 = vpack.c.bf16 %v1101_v56, %v1101_v56 }
 0x27f   :  { %999 = vmatmul.mubr.bf16.vlgmr.msra.gmra.mrb[4].mxu1 %v487_v57 }
 0x280   :  { %1038 = vmatprep.mubr.msk.bf16.mxu1 %vm1355_vm0, %v1354_v0  ;;  %1023 = vmatpush3.bf16.msra.mxu1 %v1092_v62 }
 0x281   :  { %1024 = vmatprep.subr.bf16.mxu1 %v1354_v0 }
 0x284   :  { %1025 = vmatpush3.bf16.msra.mxu1 %v1093_v63 }
 0x285   :  { %1026 = vmatprep.subr.bf16.mxu1 %v1354_v0 }
 0x288   :  { %1027 = vmatpush3.bf16.msra.mxu1 %v1094_v1 }
 0x289   :  { %1028 = vmatprep.subr.bf16.mxu1 %v1354_v0 }
 0x28c   :  { %1029 = vmatpush3.bf16.msra.mxu1 %v1095_v2 }
 0x28d   :  { %1030 = vmatprep.subr.bf16.mxu1 %v1354_v0 }
 0x290   :  { %1031 = vmatpush3.bf16.msra.mxu1 %v1096_v11 }
 0x291   :  { %1032 = vmatprep.subr.bf16.mxu1 %v1354_v0 }
 0x294   :  { %1033 = vmatpush3.bf16.msra.mxu1 %v1097_v12 }
 0x295   :  { %1034 = vmatprep.subr.bf16.mxu1 %v1354_v0 }
 0x298   :  { %1035 = vmatpush3.bf16.msra.mxu1 %v1098_v13 }
 0x299   :  { %1036 = vmatprep.subr.bf16.mxu1 %v1354_v0 }
 0x29c   :  { %1037 = vmatpush3.bf16.msra.mxu1 %v1099_v14 }
 0x352   :  { %v593_v4 = vpop.f32.mrb[4].mxu1 }
 0x353   :  { %v594_v5 = vadd.f32 %v884_v3, %v593_v4  ;;  %v1000_v6 = vpop.f32.mrb[5].mxu1 }
 0x354   :  { %v596_v7 = vpop.f32.mrb[6].mxu1 }
 0x355   :  { %1102 = vtanh.f32 %v594_v5  ;;  %v1001_v8 = vpop.f32.mrb[7].mxu1 }
 0x35f   :  { %v1103_v9 = vpop.eup %1102 }
 0x360   :  { %v600_v10 = vpack.c.bf16 %v1103_v9, %v1103_v9 }
 0x362   :  { %1019 = vmatmul.mubr.bf16.vlgmr.msra.gmra.mrb[8].mxu0 %v600_v10 }
 0x435   :  { %v706_v16 = vpop.f32.mrb[8].mxu0 }
 0x436   :  { %v707_v17 = vadd.f32 %v893_v15, %v706_v16  ;;  %v1020_v18 = vpop.f32.mrb[9].mxu0 }
 0x437   :  { %v709_v19 = vpop.f32.mrb[10].mxu0 }
 0x438   :  { %1104 = vtanh.f32 %v707_v17  ;;  %v1021_v20 = vpop.f32.mrb[11].mxu0 }
 0x442   :  { %v1105_v21 = vpop.eup %1104 }
 0x443   :  { %v713_v22 = vpack.c.bf16 %v1105_v21, %v1105_v21 }
 0x445   :  { %1039 = vmatmul.mubr.bf16.vlgmr.msra.gmra.mrb[8].mxu1 %v713_v22 }
 0x518   :  { %v819_v24 = vpop.f32.mrb[8].mxu1 }
 0x519   :  { %v820_v25 = vadd.f32 %v902_v23, %v819_v24  ;;  %v1040_v26 = vpop.f32.mrb[9].mxu1 }
 0x51a   :  { %v822_v0 = vpop.f32.mrb[10].mxu1 }
 0x51b   :  { %v830_v27 = vand.u32 2147483647, %v820_v25  ;;  %v1041_v28 = vpop.f32.mrb[11].mxu1  ;;  %v827_v41 = vmax.f32 %v820_v25, 0.0  ;;  %vm828_vm3 = vcmp.ne.f32.partialorder %v820_v25, %v820_v25 }
 0x51d   :  { %v831_v29 = vsub.f32 0.0, %v830_v27 }
 0x51f   :  { %v832_v30 = vmul.f32 1.442695, %v831_v29 }
 0x521   :  { %1106 = vpow2.f32 %v832_v30 }
 0x52b   :  { %v1107_v31 = vpop.eup %1106 }
 0x52c   :  { %v834_v32 = vadd.f32 1.0, %v1107_v31  ;;  %v837_v33 = vmul.f32 -0.5, %v1107_v31  ;;  %v840_v36 = vand.u32 2147483647, %v1107_v31 }
 0x52e   :  { %1108 = vlog2.f32 %v834_v32  ;;  %v838_v34 = vadd.f32 1.0, %v837_v33  ;;  %vm841_vm2 = vcmp.lt.f32.partialorder %v840_v36, 0.0004427343 }
 0x530   :  { %v839_v39 = vmul.f32 %v1107_v31, %v838_v34 }
 0x538   :  { %v1109_v37 = vpop.eup %1108 }
 0x539   :  { %v836_v38 = vmul.f32 0.6931472, %v1109_v37 }
 0x53b   :  { %v842_v42 = vsel %vm841_vm2, %v839_v39, %v836_v38 }
 0x53c   :  { %v843_v43 = vadd.f32 %v842_v42, %v827_v41 }
 0x53e   :  { %v844_v44 = vsel %vm828_vm3, %v820_v25, %v843_v43 }
 0x53f   :  { %v845_v45 = vadd.f32 1e-05, %v844_v44 }
 0x541   :  { %v847_v46 = vsel %vm846_vm4, %v845_v45, %v820_v25 }
 0x542   :  { %848 = vst [vmem:[%s1668_s14] sm:$0xff] %v847_v46 }
 0x543   :  { %853 = vsyncpa [#allocation3], 1 }
 0x544   :  { %854 = vsyncpa [#allocation5], 1 }
 0x545   :  { %855 = vsyncpa [#allocation8], 1 }
 0x546   :  { %856 = vsyncpa [#allocation11], 1 }
 0x547   :  { %857 = vsyncpa [#allocation14], 1 }
 0x548   :  { %858 = vsyncpa [#allocation17], 1 }

</bundles_post_ra>
